<compile_context>
chip_gen: v5e
topology: v5e:2x2
jax: 0.10.0
libtpu: 0.0.40
codegen_flags: <defaults>
</compile_context>

<pallas_src>
import functools

import jax
import jax.numpy as jnp
from jax.experimental import pallas as pl
from jax.experimental.pallas import tpu as pltpu

_HIDDEN = (64, 32, 16)
_MAX_TB = 8192          # VMEM-safe batch-tile cap (comfortably fits v7x 64 MiB)


def _round_up(n, m):
    return ((n + m - 1) // m) * m


def _qnet_kernel(x_ref,
                 w1_ref, b1_ref,
                 w2_ref, b2_ref,
                 w3_ref, b3_ref,
                 w4_ref, b4_ref,
                 o_ref):
    """One batch tile: 4 matmuls + biases + 3 ReLUs, fully in VMEM.

    Matmul inputs are bf16 (native MXU rate); accumulation, bias add and ReLU
    stay f32. Output is written unpadded (tb, action_size).
    """
    h = x_ref[...].astype(jnp.bfloat16)

    h = jnp.dot(h, w1_ref[...], preferred_element_type=jnp.float32) + b1_ref[...]
    h = jnp.maximum(h, 0.0).astype(jnp.bfloat16)

    h = jnp.dot(h, w2_ref[...], preferred_element_type=jnp.float32) + b2_ref[...]
    h = jnp.maximum(h, 0.0).astype(jnp.bfloat16)

    h = jnp.dot(h, w3_ref[...], preferred_element_type=jnp.float32) + b3_ref[...]
    h = jnp.maximum(h, 0.0).astype(jnp.bfloat16)

    out = jnp.dot(h, w4_ref[...], preferred_element_type=jnp.float32) + b4_ref[...]
    o_ref[...] = out.astype(o_ref.dtype)


@functools.partial(jax.jit, static_argnames=("block_batch",))
def qnetwork_forward(state, params, *, block_batch=8192):
    """Fused QNetwork forward pass via pallas_call.

    state:  (B, state_size) float32 (or bfloat16)
    params: dict with w1..w4 of shape (in, out) (bf16 preferred, see
            prepare_qnetwork_params) and b1..b4 of shape (1, out) f32.
    returns (B, action_size) float32
    """
    batch, state_size = state.shape
    action_size = params["w4"].shape[1]

    # --- batch tiling: multiple of 8, large to amortize per-step overhead ---
    tb = _round_up(min(block_batch, _MAX_TB, _round_up(batch, 8)), 8)
    # For large batches that would otherwise be a single tile, split into >=2
    # "parallel" tiles so v7x's 2 TensorCores both get work.
    if batch >= 2048 and pl.cdiv(batch, tb) < 2:
        tb = _round_up(pl.cdiv(batch, 2), 8)
    grid = (pl.cdiv(batch, tb),)   # partial final tile handled by Pallas

    args = (state,
            params["w1"], params["b1"],
            params["w2"], params["b2"],
            params["w3"], params["b3"],
            params["w4"], params["b4"])

    def resident(a):
        # Full-array block, constant index map -> DMA'd to VMEM once and kept
        # resident across all batch tiles.
        return pl.BlockSpec(a.shape, lambda i: (0, 0))

    in_specs = ([pl.BlockSpec((tb, state_size), lambda i: (i, 0))]
                + [resident(a) for a in args[1:]])

    # Honest VMEM budget: double-buffered state/output tiles, resident
    # weights, f32+bf16 activation temps, plus headroom. Clamped to stay
    # inside v7x's 64 MiB physical VMEM.
    weight_bytes = sum(int(a.size) * a.dtype.itemsize for a in args[1:])
    per_tile_bytes = tb * (state_size * 4 + action_size * 4
                           + sum(_HIDDEN) * 6 + state_size * 2)
    vmem_limit = min(max(4 * per_tile_bytes + 2 * weight_bytes + (8 << 20),
                         16 << 20),
                     48 << 20)

    out = pl.pallas_call(
        _qnet_kernel,
        out_shape=jax.ShapeDtypeStruct((batch, action_size), jnp.float32),
        grid=grid,
        in_specs=in_specs,
        out_specs=pl.BlockSpec((tb, action_size), lambda i: (i, 0)),
        compiler_params=pltpu.CompilerParams(
            # Independent batch tiles -> megacore sharding on v7x (2 TCs).
            dimension_semantics=("parallel",),
            vmem_limit_bytes=int(vmem_limit),
        ),
    )(*args)

    return out


def init_qnetwork_params(key, state_size, action_size):
    """Mirror nn.Linear default init (uniform +/- 1/sqrt(fan_in)), f32.

    Weights stored as (in_features, out_features) so y = x @ W + b matches
    PyTorch's x @ W.T + b; biases stored as (1, out_features).
    """
    sizes = [(state_size, 64), (64, 32), (32, 16), (16, action_size)]
    params = {}
    for i, (fan_in, fan_out) in enumerate(sizes, start=1):
        key, kw, kb = jax.random.split(key, 3)
        bound = 1.0 / jnp.sqrt(jnp.float32(fan_in))
        params[f"w{i}"] = jax.random.uniform(
            kw, (fan_in, fan_out), jnp.float32, -bound, bound)
        params[f"b{i}"] = jax.random.uniform(
            kb, (1, fan_out), jnp.float32, -bound, bound)
    return params


def prepare_qnetwork_params(params_f32):
    """One-time cast of weight matrices to bf16 (biases stay f32).

    Hoisted out of the forward pass so no per-call XLA cast kernels are run.
    """
    prepped = dict(params_f32)
    for i in range(1, 5):
        prepped[f"w{i}"] = params_f32[f"w{i}"].astype(jnp.bfloat16)
    return prepped


def _reference_forward_f32(state, params_f32):
    """Pure-f32 reference matching the PyTorch module."""
    h = state
    for i in range(1, 5):
        h = h @ params_f32[f"w{i}"] + params_f32[f"b{i}"]
        if i < 4:
            h = jnp.maximum(h, 0.0)
    return h


def _reference_forward_mixed(state, prepped):
    """Mirrors the kernel's bf16-matmul / f32-accumulate math exactly."""
    h = state.astype(jnp.bfloat16)
    for i in range(1, 5):
        h = jnp.dot(h, prepped[f"w{i}"],
                    preferred_element_type=jnp.float32) + prepped[f"b{i}"]
        if i < 4:
            h = jnp.maximum(h, 0.0).astype(jnp.bfloat16)
    return h


if __name__ == "__main__":
    state_size = 8      # dimension of each state
    action_size = 4     # dimension of each action

    key = jax.random.PRNGKey(0)
    key, k_state, k_state2 = jax.random.split(key, 3)
    params_f32 = init_qnetwork_params(key, state_size, action_size)
    params = prepare_qnetwork_params(params_f32)   # bf16 weights, cast once

    # Small batch (single tile).
    state = jax.random.normal(k_state, (8, state_size), jnp.float32)
    q_values = jax.block_until_ready(qnetwork_forward(state, params))
    ref_mixed = jax.block_until_ready(_reference_forward_mixed(state, params))
    ref_f32 = jax.block_until_ready(_reference_forward_f32(state, params_f32))
    assert q_values.shape == (8, action_size)
    assert jnp.allclose(q_values, ref_mixed, atol=5e-3, rtol=5e-3)
    assert jnp.allclose(q_values, ref_f32, atol=1e-1, rtol=1e-1)

    # Ragged batch: multiple tiles + a partial final tile (no wrapper padding),
    # small block_batch to exercise the grid / partial-block path.
    state2 = jax.random.normal(k_state2, (100, state_size), jnp.float32)
    q2 = jax.block_until_ready(qnetwork_forward(state2, params, block_batch=32))
    ref2 = jax.block_until_ready(_reference_forward_mixed(state2, params))
    assert q2.shape == (100, action_size)
    assert jnp.allclose(q2, ref2, atol=5e-3, rtol=5e-3)

    print("KERNEL_OK")
</pallas_src>

<mosaic_0001>
module attributes {stable_mosaic.version = 11 : i64} {
  func.func @_qnet_kernel(%arg0: i32, %arg1: memref<8x8xf32, #tpu.memory_space<vmem>>, %arg2: memref<8x64xbf16, #tpu.memory_space<vmem>>, %arg3: memref<1x64xf32, #tpu.memory_space<vmem>>, %arg4: memref<64x32xbf16, #tpu.memory_space<vmem>>, %arg5: memref<1x32xf32, #tpu.memory_space<vmem>>, %arg6: memref<32x16xbf16, #tpu.memory_space<vmem>>, %arg7: memref<1x16xf32, #tpu.memory_space<vmem>>, %arg8: memref<16x4xbf16, #tpu.memory_space<vmem>>, %arg9: memref<1x4xf32, #tpu.memory_space<vmem>>, %arg10: memref<8x4xf32, #tpu.memory_space<vmem>>) attributes {dimension_semantics = [#tpu.dimension_semantics<parallel>], iteration_bounds = array<i64: 1>, scalar_prefetch = 0 : i64, scratch_operands = 0 : i64, tpu.core_type = #tpu.core_type<tc>, window_params = [{transform_indices = @transform_0, window_bounds = array<i64: 8, 8>}, {pipeline_mode = #tpu.pipeline_mode<synchronous>, transform_indices = @transform_1, window_bounds = array<i64: 8, 64>}, {pipeline_mode = #tpu.pipeline_mode<synchronous>, transform_indices = @transform_2, window_bounds = array<i64: 1, 64>}, {pipeline_mode = #tpu.pipeline_mode<synchronous>, transform_indices = @transform_3, window_bounds = array<i64: 64, 32>}, {pipeline_mode = #tpu.pipeline_mode<synchronous>, transform_indices = @transform_4, window_bounds = array<i64: 1, 32>}, {pipeline_mode = #tpu.pipeline_mode<synchronous>, transform_indices = @transform_5, window_bounds = array<i64: 32, 16>}, {pipeline_mode = #tpu.pipeline_mode<synchronous>, transform_indices = @transform_6, window_bounds = array<i64: 1, 16>}, {pipeline_mode = #tpu.pipeline_mode<synchronous>, transform_indices = @transform_7, window_bounds = array<i64: 16, 4>}, {pipeline_mode = #tpu.pipeline_mode<synchronous>, transform_indices = @transform_8, window_bounds = array<i64: 1, 4>}, {transform_indices = @transform_9, window_bounds = array<i64: 8, 4>}]} {
    %c0 = arith.constant 0 : index
    %c0_0 = arith.constant 0 : index
    %0 = vector.load %arg1[%c0, %c0_0] : memref<8x8xf32, #tpu.memory_space<vmem>>, vector<8x8xf32>
    %1 = arith.truncf %0 : vector<8x8xf32> to vector<8x8xbf16>
    %c0_1 = arith.constant 0 : index
    %c0_2 = arith.constant 0 : index
    %2 = vector.load %arg2[%c0_1, %c0_2] : memref<8x64xbf16, #tpu.memory_space<vmem>>, vector<8x64xbf16>
    %cst = arith.constant dense<0.000000e+00> : vector<8x64xf32>
    %3 = tpu.matmul %1, %2, %cst {dimension_numbers = #tpu.dot_dimension_numbers<[1], [0], [0], [1], [0, 0, 1, 1], [], []>} : vector<8x8xbf16>, vector<8x64xbf16>, vector<8x64xf32> -> vector<8x64xf32>
    %c0_3 = arith.constant 0 : index
    %c0_4 = arith.constant 0 : index
    %4 = vector.load %arg3[%c0_3, %c0_4] : memref<1x64xf32, #tpu.memory_space<vmem>>, vector<1x64xf32>
    %5 = vector.broadcast %4 : vector<1x64xf32> to vector<8x64xf32>
    %6 = arith.addf %3, %5 : vector<8x64xf32>
    %cst_5 = arith.constant 0.000000e+00 : f32
    %7 = vector.broadcast %cst_5 : f32 to vector<8x64xf32>
    %8 = arith.maximumf %6, %7 : vector<8x64xf32>
    %9 = arith.truncf %8 : vector<8x64xf32> to vector<8x64xbf16>
    %c0_6 = arith.constant 0 : index
    %c0_7 = arith.constant 0 : index
    %10 = vector.load %arg4[%c0_6, %c0_7] : memref<64x32xbf16, #tpu.memory_space<vmem>>, vector<64x32xbf16>
    %cst_8 = arith.constant dense<0.000000e+00> : vector<8x32xf32>
    %11 = tpu.matmul %9, %10, %cst_8 {dimension_numbers = #tpu.dot_dimension_numbers<[1], [0], [0], [1], [0, 0, 1, 1], [], []>} : vector<8x64xbf16>, vector<64x32xbf16>, vector<8x32xf32> -> vector<8x32xf32>
    %c0_9 = arith.constant 0 : index
    %c0_10 = arith.constant 0 : index
    %12 = vector.load %arg5[%c0_9, %c0_10] : memref<1x32xf32, #tpu.memory_space<vmem>>, vector<1x32xf32>
    %13 = vector.broadcast %12 : vector<1x32xf32> to vector<8x32xf32>
    %14 = arith.addf %11, %13 : vector<8x32xf32>
    %cst_11 = arith.constant 0.000000e+00 : f32
    %15 = vector.broadcast %cst_11 : f32 to vector<8x32xf32>
    %16 = arith.maximumf %14, %15 : vector<8x32xf32>
    %17 = arith.truncf %16 : vector<8x32xf32> to vector<8x32xbf16>
    %c0_12 = arith.constant 0 : index
    %c0_13 = arith.constant 0 : index
    %18 = vector.load %arg6[%c0_12, %c0_13] : memref<32x16xbf16, #tpu.memory_space<vmem>>, vector<32x16xbf16>
    %cst_14 = arith.constant dense<0.000000e+00> : vector<8x16xf32>
    %19 = tpu.matmul %17, %18, %cst_14 {dimension_numbers = #tpu.dot_dimension_numbers<[1], [0], [0], [1], [0, 0, 1, 1], [], []>} : vector<8x32xbf16>, vector<32x16xbf16>, vector<8x16xf32> -> vector<8x16xf32>
    %c0_15 = arith.constant 0 : index
    %c0_16 = arith.constant 0 : index
    %20 = vector.load %arg7[%c0_15, %c0_16] : memref<1x16xf32, #tpu.memory_space<vmem>>, vector<1x16xf32>
    %21 = vector.broadcast %20 : vector<1x16xf32> to vector<8x16xf32>
    %22 = arith.addf %19, %21 : vector<8x16xf32>
    %cst_17 = arith.constant 0.000000e+00 : f32
    %23 = vector.broadcast %cst_17 : f32 to vector<8x16xf32>
    %24 = arith.maximumf %22, %23 : vector<8x16xf32>
    %25 = arith.truncf %24 : vector<8x16xf32> to vector<8x16xbf16>
    %c0_18 = arith.constant 0 : index
    %c0_19 = arith.constant 0 : index
    %26 = vector.load %arg8[%c0_18, %c0_19] : memref<16x4xbf16, #tpu.memory_space<vmem>>, vector<16x4xbf16>
    %cst_20 = arith.constant dense<0.000000e+00> : vector<8x4xf32>
    %27 = tpu.matmul %25, %26, %cst_20 {dimension_numbers = #tpu.dot_dimension_numbers<[1], [0], [0], [1], [0, 0, 1, 1], [], []>} : vector<8x16xbf16>, vector<16x4xbf16>, vector<8x4xf32> -> vector<8x4xf32>
    %c0_21 = arith.constant 0 : index
    %c0_22 = arith.constant 0 : index
    %28 = vector.load %arg9[%c0_21, %c0_22] : memref<1x4xf32, #tpu.memory_space<vmem>>, vector<1x4xf32>
    %29 = vector.broadcast %28 : vector<1x4xf32> to vector<8x4xf32>
    %30 = arith.addf %27, %29 : vector<8x4xf32>
    %c0_23 = arith.constant 0 : index
    %c0_24 = arith.constant 0 : index
    %31 = vector.load %arg10[%c0_23, %c0_24] : memref<8x4xf32, #tpu.memory_space<vmem>>, vector<8x4xf32>
    tpu.vector_store %arg10[%c0_23, %c0_24], %30 {strides = array<i32>} : memref<8x4xf32, #tpu.memory_space<vmem>>, vector<8x4xf32>,
    return
  }
  func.func @transform_0(%arg0: i32) -> (i32, i32) {
    %c0_i32 = arith.constant 0 : i32
    %c0_i32_0 = arith.constant 0 : i32
    return %arg0, %c0_i32 : i32, i32
  }
  func.func @transform_1(%arg0: i32) -> (i32, i32) {
    %c0_i32 = arith.constant 0 : i32
    %c0_i32_0 = arith.constant 0 : i32
    %c0_i32_1 = arith.constant 0 : i32
    return %c0_i32, %c0_i32_0 : i32, i32
  }
  func.func @transform_2(%arg0: i32) -> (i32, i32) {
    %c0_i32 = arith.constant 0 : i32
    %c0_i32_0 = arith.constant 0 : i32
    %c0_i32_1 = arith.constant 0 : i32
    return %c0_i32, %c0_i32_0 : i32, i32
  }
  func.func @transform_3(%arg0: i32) -> (i32, i32) {
    %c0_i32 = arith.constant 0 : i32
    %c0_i32_0 = arith.constant 0 : i32
    %c0_i32_1 = arith.constant 0 : i32
    return %c0_i32, %c0_i32_0 : i32, i32
  }
  func.func @transform_4(%arg0: i32) -> (i32, i32) {
    %c0_i32 = arith.constant 0 : i32
    %c0_i32_0 = arith.constant 0 : i32
    %c0_i32_1 = arith.constant 0 : i32
    return %c0_i32, %c0_i32_0 : i32, i32
  }
  func.func @transform_5(%arg0: i32) -> (i32, i32) {
    %c0_i32 = arith.constant 0 : i32
    %c0_i32_0 = arith.constant 0 : i32
    %c0_i32_1 = arith.constant 0 : i32
    return %c0_i32, %c0_i32_0 : i32, i32
  }
  func.func @transform_6(%arg0: i32) -> (i32, i32) {
    %c0_i32 = arith.constant 0 : i32
    %c0_i32_0 = arith.constant 0 : i32
    %c0_i32_1 = arith.constant 0 : i32
    return %c0_i32, %c0_i32_0 : i32, i32
  }
  func.func @transform_7(%arg0: i32) -> (i32, i32) {
    %c0_i32 = arith.constant 0 : i32
    %c0_i32_0 = arith.constant 0 : i32
    %c0_i32_1 = arith.constant 0 : i32
    return %c0_i32, %c0_i32_0 : i32, i32
  }
  func.func @transform_8(%arg0: i32) -> (i32, i32) {
    %c0_i32 = arith.constant 0 : i32
    %c0_i32_0 = arith.constant 0 : i32
    %c0_i32_1 = arith.constant 0 : i32
    return %c0_i32, %c0_i32_0 : i32, i32
  }
  func.func @transform_9(%arg0: i32) -> (i32, i32) {
    %c0_i32 = arith.constant 0 : i32
    %c0_i32_0 = arith.constant 0 : i32
    return %arg0, %c0_i32 : i32, i32
  }
}

</mosaic_0001>

<bundles_post_ra>
// kernel: qnetwork_forward.1
= control target key start
LH: loop header
LB: loop body
LE: loop exit
PB: predicated region body
PF: predicated region fallthrough
CT: control target
= control target key end

     0   :  { %vm44_vm0 = vcmask 1043456   ;;  %vm40_vm1 = vcmask 64512   ;;  %vm99_vm2 = vcmask 523264   ;;  %vm138_vm3 = vcmask 261120   ;;  %s327_s1 = inlined_call_operand.vmem [shape: bf16[8,64], index: 1, kind: input, shape index: {}]   ;;  %s328_s0 = inlined_call_operand.vmem [shape: f32[8,8], index: 0, kind: input, shape index: {}]   ;;  %s329_s3 = inlined_call_operand.vmem [shape: bf16[64,32], index: 3, kind: input, shape index: {}]   ;;  %s330_s2 = inlined_call_operand.vmem [shape: f32[1,64], index: 2, kind: input, shape index: {}]   ;;  %s331_s4 = inlined_call_operand.vmem [shape: f32[1,32], index: 4, kind: input, shape index: {}]   ;;  %s332_s6 = inlined_call_operand.vmem [shape: f32[1,16], index: 6, kind: input, shape index: {}]   ;;  %s333_s5 = inlined_call_operand.vmem [shape: bf16[32,16], index: 5, kind: input, shape index: {}]   ;;  %s334_s8 = inlined_call_operand.vmem [shape: f32[1,4], index: 8, kind: input, shape index: {}]   ;;  %s335_s7 = inlined_call_operand.vmem [shape: bf16[16,4], index: 7, kind: input, shape index: {}]   ;;  %s336_s9 = inlined_call_operand.vmem [shape: f32[8,4], index: 9, kind: output, shape index: {}]  }
   0x1   :  { %v35_v0 = vld [vmem:[%s327_s1] sm:$0xf]  ;;  %v227_v2 = vld [vmem:[%s329_s3 + $0x18] sm:$0xff]  ;;  %v226_v5 = vld [vmem:[%s329_s3 + $0x10] sm:$0xff]  ;;  %vm169_vm4 = vcmask 130048   ;;  %vm186_vm5 = vcmask 31744  }
   0x2   :  { %v33_v1 = vld [vmem:[%s328_s0] sm:$0xff]  ;;  %v46_v3 = vsel %vm44_vm0, %v35_v0, 0  ;;  %107 = vmatpush.bf16.msra.mxu1 %v227_v2  ;;  %v225_v6 = vld [vmem:[%s329_s3 + $0x8] sm:$0xff] }
   0x3   :  { %v34_v4 = vpack.c.bf16 %v33_v1, %v33_v1  ;;  %55 = vmatpush.bf16.msra.mxu0 %v46_v3  ;;  %v224_v7 = vld [vmem:[%s329_s3] sm:$0xff]  ;;  %v229_v14 = vld [vmem:[%s333_s5 + $0x8] sm:$0xff] }
   0x4   :  { %v231_v8 = vld [vmem:[%s330_s2] ss:$0 sm:$0xff]  ;;  %148 = vmatpush.bf16.msra.mxu2 %v229_v14 }
   0x5   :  { %v228_v15 = vld [vmem:[%s333_s5] sm:$0xff] }
   0x6   :  { %192 = vmatmul.msk.bf16.vlgmr.msra.gmra.mxu0 %vm40_vm1, %v34_v4  ;;  %108 = vmatpush.bf16.msra.mxu1 %v226_v5  ;;  %v232_v16 = vld [vmem:[%s331_s4] ss:$0 sm:$0xff] }
   0x7   :  { %v230_v22 = vld [vmem:[%s335_s7] sm:$0xff] }
   0x8   :  { %149 = vmatpush.bf16.msra.mxu2 %v228_v15  ;;  %180 = vmatpush.bf16.msra.mxu3 %v230_v22  ;;  %v233_v23 = vld [vmem:[%s332_s6] ss:$0 sm:$0xff] }
   0x9   :  { %v234_v29 = vld [vmem:[%s334_s8] ss:$0 sm:$0xff] }
   0xa   :  { %109 = vmatpush.bf16.msra.mxu1 %v225_v6 }
   0xe   :  { %110 = vmatpush.bf16.msra.mxu1 %v224_v7 }
  0x83   :  { %v57_v9 = vpop.f32.mrf.mxu0 }
  0x84   :  { %v58_v10 = vadd.f32 %v231_v8, %v57_v9 }
  0x86   :  { %v61_v11 = vmax.f32 %v58_v10, 0.0 }
  0x88   :  { %v62_v12 = vpack.c.bf16 %v61_v11, %v61_v11 }
  0x8a   :  { %209 = vmatmul.msk.bf16.vlgmr.msra.gmra.mxu1 %vm99_vm2, %v62_v12 }
  0x8b   :  { %v59_v13 = vpop.f32.mrf.mxu0 }
 0x107   :  { %v112_v17 = vpop.f32.mrf.mxu1 }
 0x108   :  { %v113_v18 = vadd.f32 %v232_v16, %v112_v17 }
 0x10a   :  { %v116_v19 = vmax.f32 %v113_v18, 0.0 }
 0x10c   :  { %v117_v20 = vpack.c.bf16 %v116_v19, %v116_v19 }
 0x10e   :  { %218 = vmatmul.msk.bf16.vlgmr.msra.gmra.mxu2 %vm138_vm3, %v117_v20 }
 0x10f   :  { %v114_v21 = vpop.f32.mrf.mxu1 }
 0x191   :  { %v151_v24 = vpop.f32.mrf.mxu2 }
 0x192   :  { %v152_v25 = vadd.f32 %v233_v23, %v151_v24 }
 0x194   :  { %v155_v26 = vmax.f32 %v152_v25, 0.0 }
 0x196   :  { %v156_v27 = vpack.c.bf16 %v155_v26, %v155_v26 }
 0x198   :  { %223 = vmatmul.msk.bf16.vlgmr.msra.gmra.mxu3 %vm169_vm4, %v156_v27 }
 0x199   :  { %v153_v28 = vpop.f32.mrf.mxu2 }
 0x21b   :  { %v182_v30 = vpop.f32.mrf.mxu3 }
 0x21c   :  { %v183_v31 = vadd.f32 %v234_v29, %v182_v30 }
 0x21e   :  { %187 = vst.msk [vmem:[%s336_s9] sm:$0xff] %vm186_vm5, %v183_v31 }
 0x223   :  { %v184_v32 = vpop.f32.mrf.mxu3 }

</bundles_post_ra>
